<compile_context>
chip_gen: v6e
topology: v6e:2x2x1
jax: 0.10.0
libtpu: 0.0.40
codegen_flags: <defaults>
</compile_context>

<pallas_src>
import functools

import jax
import jax.numpy as jnp
from jax.experimental import pallas as pl
from jax.experimental.pallas import tpu as pltpu


def _gather_kernel(idx_ref, emb_ref, out_ref, *, num_nodes, use_onehot):
    """One grid step: gather `rows_per_block` embedding rows.

    idx_ref: VMEM, [rows_per_block, 1] int32 -- this block's indices only.
    emb_ref: VMEM, [v_p, d_p] -- full (padded) embedding table, resident
             (constant index_map -> fetched once, single-buffered).
    out_ref: VMEM output tile, [rows_per_block, d_p].
    """
    idx = idx_ref[...]                                   # (rpb, 1) int32
    # Bounds safety: OOB indices on a VMEM ref are not checked at runtime.
    idx = jnp.clip(idx, 0, num_nodes - 1)
    table = emb_ref[...]                                 # (v_p, d_p)

    if use_onehot:
        # One-hot MXU matmul gather: exact (0/1 weights), runs on the otherwise
        # idle MXU instead of the serialized XLU/load-slot gather path.
        rpb = idx.shape[0]
        v_p = table.shape[0]
        cols = jax.lax.broadcasted_iota(jnp.int32, (rpb, v_p), dimension=1)
        onehot = (idx == cols).astype(table.dtype)       # (rpb, v_p), lane-broadcast of idx
        out = jnp.dot(onehot, table, preferred_element_type=jnp.float32)
        out_ref[...] = out.astype(out_ref.dtype)
    else:
        # Large-table fallback: vectorized row gather on the VMEM-resident table.
        # Indices are already clamped, so "clip" is a no-op safety net.
        # TODO(synk): for tables that do not fit per-TC VMEM, switch to an
        # HBM-resident table (memory_space=pl.ANY) with batched async-DMA row
        # gather instead of a resident table.
        out_ref[...] = jnp.take(table, idx[:, 0], axis=0, mode="clip")


def node_id_feature_encoder(node_idx, emb, *, rows_per_block=1024,
                            onehot_max_nodes=4096):
    """Pallas equivalent of NodeIdFeatureEncoder.forward: emb[node_idx]."""
    assert rows_per_block % 8 == 0, "rows_per_block must be sublane-aligned"
    n = node_idx.shape[0]
    num_nodes, d = emb.shape
    itemsize = emb.dtype.itemsize

    # Lane-dense output / table: pad emb_dim up to a multiple of 128; pad the
    # table rows to a multiple of 128 (MXU-friendly for the one-hot path,
    # negligible extra bytes).  Padded table rows are zero and never selected
    # (indices are clamped to [0, num_nodes-1]).
    d_p = ((d + 127) // 128) * 128
    v_p = ((num_nodes + 127) // 128) * 128
    emb_p = emb
    if (v_p, d_p) != (num_nodes, d):
        emb_p = jnp.pad(emb, ((0, v_p - num_nodes), (0, d_p - d)))

    use_onehot = v_p <= onehot_max_nodes

    # Pick the effective block size: don't pad tiny N up to a huge block.
    rpb = min(rows_per_block, max(8, ((n + 7) // 8) * 8))
    num_blocks = pl.cdiv(n, rpb)
    n_p = num_blocks * rpb

    # Indices, one per sublane-row (lane dim of 1); pad slots gather row 0 and
    # are sliced off below.
    idx = node_idx.astype(jnp.int32)
    if n_p != n:
        idx = jnp.pad(idx, (0, n_p - n))
    idx2d = idx.reshape(n_p, 1)

    # Explicit VMEM budget: resident table (single-buffered) + double-buffered
    # idx tile (lane-padded to 128) + double-buffered output tile + one-hot
    # scratch, with ~1.5x headroom, clamped to [32 MiB, 128 MiB].
    table_bytes = v_p * d_p * itemsize
    idx_bytes = 2 * rpb * 128 * 4
    out_bytes = 2 * rpb * d_p * itemsize
    p_bytes = rpb * v_p * 4 if use_onehot else 0
    vmem_limit = int(min(128 * 1024 * 1024,
                         max(32 * 1024 * 1024,
                             int(1.5 * (table_bytes + idx_bytes + out_bytes + p_bytes))
                             + (4 << 20))))

    kernel = functools.partial(_gather_kernel, num_nodes=num_nodes,
                               use_onehot=use_onehot)
    out_p = pl.pallas_call(
        kernel,
        out_shape=jax.ShapeDtypeStruct((n_p, d_p), emb.dtype),
        grid_spec=pltpu.PrefetchScalarGridSpec(
            num_scalar_prefetch=0,
            grid=(num_blocks,),
            in_specs=[
                # Per-block index slab: only this step's indices are pipelined.
                pl.BlockSpec((rpb, 1), lambda i: (i, 0)),
                # Full table resident in VMEM; constant index_map -> fetched
                # once; single-buffered to halve its VMEM footprint.
                pl.BlockSpec((v_p, d_p), lambda i: (0, 0),
                             pipeline_mode=pl.Buffered(1)),
            ],
            out_specs=pl.BlockSpec((rpb, d_p), lambda i: (i, 0)),
        ),
        compiler_params=pltpu.CompilerParams(
            # Row blocks are fully independent -> shard across TCs on v7x.
            dimension_semantics=("parallel",),
            vmem_limit_bytes=vmem_limit),
    )(idx2d, emb_p)

    return out_p[:n, :d]


if __name__ == "__main__":
    key = jax.random.PRNGKey(0)
    k_emb, k_idx, k_idx2 = jax.random.split(key, 3)

    num_nodes = 64     # size of the (synthetic) embedding table
    emb_dim = 128      # embedding width (lane-aligned)
    n_idx = 8          # number of node indices to look up

    # Deterministic synthetic embedding table (stands in for torch.load(emb_path)).
    emb = jax.random.normal(k_emb, (num_nodes, emb_dim), dtype=jnp.float32)
    node_idx = jax.random.randint(k_idx, (n_idx,), 0, num_nodes, dtype=jnp.int32)

    out = node_id_feature_encoder(node_idx, emb)
    out = jax.block_until_ready(out)
    ref = emb[node_idx]
    assert out.shape == (n_idx, emb_dim)
    assert jnp.allclose(out, ref), "mismatch vs reference gather (small case)"

    # Second check: ragged N spanning multiple grid blocks (exercises padding,
    # multi-block output tiling and the parallel grid) with a small block size.
    n_idx2 = 300
    node_idx2 = jax.random.randint(k_idx2, (n_idx2,), 0, num_nodes, dtype=jnp.int32)
    out2 = node_id_feature_encoder(node_idx2, emb, rows_per_block=128)
    out2 = jax.block_until_ready(out2)
    ref2 = emb[node_idx2]
    assert out2.shape == (n_idx2, emb_dim)
    assert jnp.allclose(out2, ref2), "mismatch vs reference gather (multi-block case)"

    print("KERNEL_OK")
</pallas_src>

<mosaic_0001>
module attributes {stable_mosaic.version = 11 : i64} {
  func.func @_gather_kernel(%arg0: i32, %arg1: memref<8x1xi32, #tpu.memory_space<vmem>>, %arg2: memref<128x128xf32, #tpu.memory_space<vmem>>, %arg3: memref<8x128xf32, #tpu.memory_space<vmem>>) attributes {dimension_semantics = [#tpu.dimension_semantics<parallel>], iteration_bounds = array<i64: 1>, scalar_prefetch = 0 : i64, scratch_operands = 0 : i64, tpu.core_type = #tpu.core_type<tc>, window_params = [{transform_indices = @transform_0, window_bounds = array<i64: 8, 1>}, {pipeline_mode = #tpu.pipeline_mode<synchronous>, transform_indices = @transform_1, window_bounds = array<i64: 128, 128>}, {transform_indices = @transform_2, window_bounds = array<i64: 8, 128>}]} {
    %c0 = arith.constant 0 : index
    %c0_0 = arith.constant 0 : index
    %0 = vector.load %arg1[%c0, %c0_0] : memref<8x1xi32, #tpu.memory_space<vmem>>, vector<8x1xi32>
    %c0_i32 = arith.constant 0 : i32
    %c63_i32 = arith.constant 63 : i32
    %1 = vector.broadcast %c0_i32 : i32 to vector<8x1xi32>
    %2 = arith.maxsi %1, %0 : vector<8x1xi32>
    %3 = vector.broadcast %c63_i32 : i32 to vector<8x1xi32>
    %4 = arith.minsi %3, %2 : vector<8x1xi32>
    %c0_1 = arith.constant 0 : index
    %c0_2 = arith.constant 0 : index
    %5 = vector.load %arg2[%c0_1, %c0_2] : memref<128x128xf32, #tpu.memory_space<vmem>>, vector<128x128xf32>
    %6 = tpu.iota {dimensions = array<i32: 1>} : vector<8x128xi32>
    %7 = vector.broadcast %4 : vector<8x1xi32> to vector<8x128xi32>
    %8 = arith.cmpi eq, %7, %6 : vector<8x128xi32>
    %9 = arith.extui %8 : vector<8x128xi1> to vector<8x128xi32>
    %10 = arith.sitofp %9 : vector<8x128xi32> to vector<8x128xf32>
    %cst = arith.constant dense<0.000000e+00> : vector<8x128xf32>
    %11 = tpu.matmul %10, %5, %cst {dimension_numbers = #tpu.dot_dimension_numbers<[1], [0], [0], [1], [0, 0, 1, 1], [], []>} : vector<8x128xf32>, vector<128x128xf32>, vector<8x128xf32> -> vector<8x128xf32>
    %c0_3 = arith.constant 0 : index
    %c0_4 = arith.constant 0 : index
    %12 = vector.load %arg3[%c0_3, %c0_4] : memref<8x128xf32, #tpu.memory_space<vmem>>, vector<8x128xf32>
    tpu.vector_store %arg3[%c0_3, %c0_4], %11 {strides = array<i32>} : memref<8x128xf32, #tpu.memory_space<vmem>>, vector<8x128xf32>,
    return
  }
  func.func @transform_0(%arg0: i32) -> (i32, i32) {
    %c0_i32 = arith.constant 0 : i32
    %c0_i32_0 = arith.constant 0 : i32
    return %arg0, %c0_i32 : i32, i32
  }
  func.func @transform_1(%arg0: i32) -> (i32, i32) {
    %c0_i32 = arith.constant 0 : i32
    %c0_i32_0 = arith.constant 0 : i32
    %c0_i32_1 = arith.constant 0 : i32
    return %c0_i32, %c0_i32_0 : i32, i32
  }
  func.func @transform_2(%arg0: i32) -> (i32, i32) {
    %c0_i32 = arith.constant 0 : i32
    %c0_i32_0 = arith.constant 0 : i32
    return %arg0, %c0_i32 : i32, i32
  }
}

</mosaic_0001>

<bundles_post_ra>
// kernel: tpu_custom_call.1
= control target key start
LH: loop header
LB: loop body
LE: loop exit
PB: predicated region body
PF: predicated region fallthrough
CT: control target
= control target key end

     0   :  { %7 = vsyncpa [#allocation3], 0  ;;  %s280_s0 = inlined_call_operand.vmem [shape: s32[8,1], index: 0, kind: input, shape index: {}]   ;;  %s281_s1 = inlined_call_operand.hbm [shape: f32[128,128], index: 1, kind: input, shape index: {}]   ;;  %s282_s2 = inlined_call_operand.hbm [shape: f32[8,128], index: 2, kind: output, shape index: {}]  }
   0x1   :  { %8 = vsyncpa [#allocation4], 0  ;;  %s248_s9 = smov [#allocation2]  }
   0x2   :  { %s16_s10 = sshll.u32 %s248_s9, 4  ;;  %s17_s10 = int_to_ptr.vmem [resolvable:$true] %s16_s10 }
   0x3   :  { %s212_s11 = scalar_lea.vmem %s17_s10, 2048  ;;  %p217_p1 = scmp.lt.s32.totalorder %s17_s10, %s17_s10 }
   0x4   :  { %p213_p0 = scmp.ne.s32.totalorder %s17_s10, %s212_s11  ;;  %p218_p2 = scmp.lt.s32.totalorder %s212_s11, %s212_s11 }
   0x6   :  { %p219_p3 = por %p218_p2, %p217_p1 }
   0x8   :  { %p220_p4 = pnand %p219_p3, %p213_p0 }
   0xa   :  { %223 = shalt.err (!%p220_p4)
}
   0xb   :  { %s249_s12 = smov 128   ;;  %s250_s13 = smov 8  }
   0xc   :  { %22 = dma.hbm_to_vmem [thread:$0]  %s281_s1, 2048, %s17_s10, [#allocation3], %s249_s12, %s249_s12, %s250_s13  }
   0xd   :  { %244 = dma.done.wait [#allocation3], 2048  }
   0xe   :  { %245 = vsyncadd [#allocation3], 4294965248  ;;  %v251_v0 = vmov 0   ;;  %v252_v1 = vmov 0.0   ;;  %v26_v2 = vld [vmem:[%s280_s0] sm:$0xff]  ;;  %v46_v3 = vld [vmem:[#allocation2 + $0x78] sm:$0xff]  ;;  %v47_v21 = vlaneseq }
   0xf   :  { %203 = vset.pattern.permute.xlu0 %v251_v0  ;;  %160 = vmatprep.subr.mxu0 %v252_v1  ;;  %v45_v4 = vld [vmem:[#allocation2 + $0x70] sm:$0xff]  ;;  %vm27_vm0 = vcmp.gt.s32.totalorder %v26_v2, 0  ;;  %vm253_vm1 = vmmov 0   ;;  %v44_v6 = vld [vmem:[#allocation2 + $0x68] sm:$0xff]  ;;  %v43_v8 = vld [vmem:[#allocation2 + $0x60] sm:$0xff]  ;;  %v254_v24 = vmov 1.0  }
  0x10   :  { %161 = vmatpush3.msra.mxu0 %v46_v3  ;;  %192 = vmatprep.mubr.msk.f32.mxu0 %vm253_vm1, %v252_v1  ;;  %v28_v5 = vsel %vm27_vm0, %v26_v2, 0  ;;  %v42_v9 = vld [vmem:[#allocation2 + $0x58] sm:$0xff]  ;;  %v41_v10 = vld [vmem:[#allocation2 + $0x50] sm:$0xff]  ;;  %v40_v11 = vld [vmem:[#allocation2 + $0x48] sm:$0xff]  ;;  %v48_v22 = vand.u32 127, %v47_v21  ;;  %s255_s0 = smov [#allocation5]  }
  0x11   :  { %162 = vmatprep.subr.mxu0 %v252_v1  ;;  %vm29_vm2 = vcmp.lt.s32.totalorder %v28_v5, 63  ;;  %v39_v12 = vld [vmem:[#allocation2 + $0x40] sm:$0xff]  ;;  %v38_v13 = vld [vmem:[#allocation2 + $0x38] sm:$0xff]  ;;  %v37_v14 = vld [vmem:[#allocation2 + $0x30] sm:$0xff]  ;;  %s132_s1 = sshll.u32 %s255_s0, 4  ;;  %s133_s1 = int_to_ptr.vmem [resolvable:$true] %s132_s1 }
  0x12   :  { %163 = vmatpush3.msra.mxu0 %v45_v4  ;;  %v30_v7 = vsel %vm29_vm2, %v28_v5, 63  ;;  %v36_v15 = vld [vmem:[#allocation2 + $0x28] sm:$0xff]  ;;  %v35_v16 = vld [vmem:[#allocation2 + $0x20] sm:$0xff]  ;;  %v34_v17 = vld [vmem:[#allocation2 + $0x18] sm:$0xff]  ;;  %s224_s18 = scalar_lea.vmem %s133_s1, 128  ;;  %p229_p6 = scmp.lt.s32.totalorder %s133_s1, %s133_s1 }
  0x13   :  { %164 = vmatprep.subr.mxu0 %v252_v1  ;;  %50 = vperm.xlu0 %203, %v30_v7   ;;  %v33_v18 = vld [vmem:[#allocation2 + $0x10] sm:$0xff]  ;;  %v32_v19 = vld [vmem:[#allocation2 + $0x8] sm:$0xff]  ;;  %v31_v20 = vld [vmem:[#allocation2] sm:$0xff]  ;;  %p225_p5 = scmp.ne.s32.totalorder %s133_s1, %s224_s18  ;;  %p230_p7 = scmp.lt.s32.totalorder %s224_s18, %s224_s18 }
  0x14   :  { %165 = vmatpush3.msra.mxu0 %v44_v6 }
  0x15   :  { %166 = vmatprep.subr.mxu0 %v252_v1  ;;  %p231_p8 = por %p230_p7, %p229_p6 }
  0x16   :  { %167 = vmatpush3.msra.mxu0 %v43_v8 }
  0x17   :  { %168 = vmatprep.subr.mxu0 %v252_v1  ;;  %p232_p9 = pnand %p231_p8, %p225_p5 }
  0x18   :  { %169 = vmatpush3.msra.mxu0 %v42_v9 }
  0x19   :  { %170 = vmatprep.subr.mxu0 %v252_v1 }
  0x1a   :  { %171 = vmatpush3.msra.mxu0 %v41_v10 }
  0x1b   :  { %172 = vmatprep.subr.mxu0 %v252_v1 }
  0x1c   :  { %173 = vmatpush3.msra.mxu0 %v40_v11 }
  0x1d   :  { %174 = vmatprep.subr.mxu0 %v252_v1 }
  0x1e   :  { %175 = vmatpush3.msra.mxu0 %v39_v12 }
  0x1f   :  { %176 = vmatprep.subr.mxu0 %v252_v1 }
  0x20   :  { %177 = vmatpush3.msra.mxu0 %v38_v13 }
  0x21   :  { %178 = vmatprep.subr.mxu0 %v252_v1 }
  0x22   :  { %179 = vmatpush3.msra.mxu0 %v37_v14 }
  0x23   :  { %180 = vmatprep.subr.mxu0 %v252_v1 }
  0x24   :  { %181 = vmatpush3.msra.mxu0 %v36_v15 }
  0x25   :  { %182 = vmatprep.subr.mxu0 %v252_v1 }
  0x26   :  { %183 = vmatpush3.msra.mxu0 %v35_v16 }
  0x27   :  { %184 = vmatprep.subr.mxu0 %v252_v1 }
  0x28   :  { %185 = vmatpush3.msra.mxu0 %v34_v17 }
  0x29   :  { %186 = vmatprep.subr.mxu0 %v252_v1 }
  0x2a   :  { %187 = vmatpush3.msra.mxu0 %v33_v18 }
  0x2b   :  { %188 = vmatprep.subr.mxu0 %v252_v1 }
  0x2c   :  { %189 = vmatpush3.msra.mxu0 %v32_v19 }
  0x2d   :  { %190 = vmatprep.subr.mxu0 %v252_v1 }
  0x2e   :  { %191 = vmatpush3.msra.mxu0 %v31_v20 }
  0x8e   :  { %v51_v23 = vpop.permute.xlu0 %50 }
  0x8f   :  { %vm52_vm3 = vcmp.eq.s32.totalorder %v51_v23, %v48_v22 }
  0x90   :  { %193 = vmatmul.mubr.msk.f32.vlgmr.msra.gmra.mxu0 %vm52_vm3, %v254_v24 }
 0x150   :  { %v121_v25 = vpop.f32.mrf.mxu0 }
 0x151   :  { %125 = vst [vmem:[#allocation5] sm:$0xff] %v121_v25 }
 0x152   :  { %v194_v26 = vpop.f32.mrf.mxu0 }
 0x153   :  { %235 = shalt.err (!%p232_p9)
}
 0x154   :  { %135 = dma.vmem_to_hbm [thread:$0]  %s133_s1, 128, %s282_s2, [#allocation4]  }
 0x155   :  { %246 = dma.done.wait [#allocation4], 128  }
 0x156   :  { %247 = vsyncadd [#allocation4], 4294967168 }
 0x157   :  { %139 = vsyncpa [#allocation3], 1 }
 0x158   :  { %140 = vsyncpa [#allocation4], 1 }

</bundles_post_ra>
